<compile_context>
chip_gen: v7x
topology: tpu7x:2x2x1
jax: 0.10.0
libtpu: 0.0.40
codegen_flags: <defaults>
</compile_context>

<pallas_src>
import functools

import jax
import jax.numpy as jnp
import numpy as np
from jax.experimental import pallas as pl
from jax.experimental.pallas import tpu as pltpu

_LANES = 128


def _topk_loss_kernel(pred_ref, tgt_ref, w_ref, out_ref, acc_ref, *, c_pad):
    i = pl.program_id(1)

    @pl.when(i == 0)
    def _():
        acc_ref[...] = jnp.zeros_like(acc_ref)

    x = pred_ref[...].astype(jnp.float32)      # (br, 128) lane-dense logits
    labels = tgt_ref[...]                      # (br, 128) int32, label repeated per class
    w = w_ref[...].astype(jnp.float32)         # (br, 128)

    # Class index of each lane = lane % c_pad (c_pad is a power of two -> bitwise AND).
    lane = jax.lax.broadcasted_iota(jnp.int32, x.shape, dimension=1)
    cls_idx = lane & (c_pad - 1)
    t = (labels == cls_idx).astype(jnp.float32)

    # Stable binary_cross_entropy_with_logits, reduction='none':
    #   max(x, 0) - x*t + log(1 + exp(-|x|))
    bce = jnp.maximum(x, 0.0) - x * t + jnp.log1p(jnp.exp(-jnp.abs(x)))

    # Pure VPU accumulate into a VMEM scratch (no per-step cross-lane reduce, no SMEM RMW).
    acc_ref[...] += bce * w

    @pl.when(i == pl.num_programs(1) - 1)
    def _():
        # One-time sublane-group reduction to an (8, 128) per-core partial.
        acc = acc_ref[...]
        partial = acc[0:8, :]
        for j in range(1, acc.shape[0] // 8):
            partial = partial + acc[8 * j:8 * (j + 1), :]
        out_ref[0] = partial


@functools.partial(jax.jit, static_argnames=("block_rows", "n_par"))
def topk_loss(pred, target, weight, avg_factor, *, block_rows=2048, n_par=2):
    num_item, num_classes = pred.shape
    assert weight.shape == pred.shape

    # Pad the class axis to a power of two (divides 128) so the flattened layout is
    # lane-dense.  Padded classes get weight 0 -> contribute exactly 0 to the loss.
    c_pad = int(pl.next_power_of_2(max(num_classes, 1)))
    assert c_pad <= _LANES, "num_classes > 128 not supported"
    # TODO(synk): support num_classes > 128 (needs a per-row class-offset input).
    if c_pad != num_classes:
        pred = jnp.pad(pred, ((0, 0), (0, c_pad - num_classes)))
        weight = jnp.pad(weight, ((0, 0), (0, c_pad - num_classes)))

    # Lane-dense flatten: (num_item, c_pad) -> (rows, 128), row-major (free reshape when
    # shapes already line up).  Pick the largest row tile that fits comfortably in VMEM.
    total = num_item * c_pad
    rows = -(-total // _LANES)
    br = min(block_rows, -(-rows // n_par))
    br = max(8, ((br + 7) // 8) * 8)
    n_tiles = -(-rows // (n_par * br))
    rows_padded = n_par * n_tiles * br
    flat_len = rows_padded * _LANES

    labels = jnp.repeat(target.astype(jnp.int32), c_pad)   # expanded to match flat layout
    pred_f = pred.reshape(-1)
    w_f = weight.reshape(-1)
    if flat_len != total:
        pad = flat_len - total
        pred_f = jnp.pad(pred_f, (0, pad))
        w_f = jnp.pad(w_f, (0, pad))                        # zero weight => zero contribution
        labels = jnp.pad(labels, (0, pad), constant_values=-1)
    pred2d = pred_f.reshape(rows_padded, _LANES)
    w2d = w_f.reshape(rows_padded, _LANES)
    t2d = labels.reshape(rows_padded, _LANES)

    # Scoped-VMEM budget: 3 double-buffered inputs + accumulator scratch, with headroom,
    # capped at 48 MiB so it stays safe on v7x (64 MiB physical).
    tile_bytes = br * _LANES * 4
    vmem_limit = int(min(48 << 20, max(16 << 20, (3 * 2 * tile_bytes + tile_bytes) * 3 // 2)))

    kernel = functools.partial(_topk_loss_kernel, c_pad=c_pad)
    row_map = lambda p, i: (p * n_tiles + i, 0)

    partials = pl.pallas_call(
        kernel,
        out_shape=jax.ShapeDtypeStruct((n_par, 8, _LANES), jnp.float32),
        grid=(n_par, n_tiles),
        in_specs=[
            pl.BlockSpec((br, _LANES), row_map),   # pred (lane-dense)
            pl.BlockSpec((br, _LANES), row_map),   # expanded target (int32)
            pl.BlockSpec((br, _LANES), row_map),   # weight (lane-dense)
        ],
        out_specs=pl.BlockSpec((1, 8, _LANES), lambda p, i: (p, 0, 0)),
        scratch_shapes=[pltpu.VMEM((br, _LANES), jnp.float32)],
        compiler_params=pltpu.CompilerParams(
            dimension_semantics=("parallel", "arbitrary"),
            vmem_limit_bytes=vmem_limit),
    )(pred2d, t2d, w2d)

    eps = jnp.float32(np.finfo(np.float32).eps)
    return jnp.sum(partials) / (jnp.asarray(avg_factor, jnp.float32) + eps)


def _topk_loss_ref(pred, target, weight, avg_factor):
    num_item, num_classes = pred.shape
    onehot = jax.nn.one_hot(target, num_classes + 1, dtype=jnp.float32)[:, :num_classes]
    x = pred.astype(jnp.float32)
    t = onehot
    bce = jnp.maximum(x, 0.0) - x * t + jnp.log1p(jnp.exp(-jnp.abs(x)))
    loss = bce * weight.astype(jnp.float32)
    eps = np.finfo(np.float32).eps
    return loss.sum() / (avg_factor + eps)


if __name__ == "__main__":
    key = jax.random.PRNGKey(0)
    k1, k2, k3 = jax.random.split(key, 3)

    num_item, num_classes = 256, 16
    pred = jax.random.normal(k1, (num_item, num_classes), dtype=jnp.float32) * 2.0
    # labels in [0, num_classes]; num_classes means "background" (all-zero one-hot row)
    target = jax.random.randint(k2, (num_item,), 0, num_classes + 1, dtype=jnp.int32)
    weight = jax.random.uniform(k3, (num_item, num_classes), dtype=jnp.float32)
    avg_factor = jnp.float32(37.0)

    out = jax.block_until_ready(topk_loss(pred, target, weight, avg_factor))
    ref = _topk_loss_ref(pred, target, weight, avg_factor)
    np.testing.assert_allclose(np.asarray(out), np.asarray(ref), rtol=1e-5, atol=1e-5)

    # Second config exercises class padding (C not a power of two) and row padding
    # (num_item not a multiple of items-per-row).
    k4, k5, k6 = jax.random.split(jax.random.PRNGKey(1), 3)
    ni2, nc2 = 100, 10
    pred2 = jax.random.normal(k4, (ni2, nc2), dtype=jnp.float32)
    target2 = jax.random.randint(k5, (ni2,), 0, nc2 + 1, dtype=jnp.int32)
    weight2 = jax.random.uniform(k6, (ni2, nc2), dtype=jnp.float32)
    out2 = jax.block_until_ready(topk_loss(pred2, target2, weight2, jnp.float32(13.0)))
    ref2 = _topk_loss_ref(pred2, target2, weight2, jnp.float32(13.0))
    np.testing.assert_allclose(np.asarray(out2), np.asarray(ref2), rtol=1e-5, atol=1e-5)

    print("KERNEL_OK")
</pallas_src>

<mosaic_0001>
module attributes {stable_mosaic.version = 11 : i64} {
  func.func @_topk_loss_kernel(%arg0: i32, %arg1: i32, %arg2: memref<16x128xf32, #tpu.memory_space<vmem>>, %arg3: memref<16x128xi32, #tpu.memory_space<vmem>>, %arg4: memref<16x128xf32, #tpu.memory_space<vmem>>, %arg5: memref<1x8x128xf32, #tpu.memory_space<vmem>>, %arg6: memref<16x128xf32, #tpu.memory_space<vmem>>) attributes {dimension_semantics = [#tpu.dimension_semantics<parallel>, #tpu.dimension_semantics<arbitrary>], iteration_bounds = array<i64: 2, 1>, scalar_prefetch = 0 : i64, scratch_operands = 1 : i64, tpu.core_type = #tpu.core_type<tc>, window_params = [{transform_indices = @transform_0, window_bounds = array<i64: 16, 128>}, {transform_indices = @transform_1, window_bounds = array<i64: 16, 128>}, {transform_indices = @transform_2, window_bounds = array<i64: 16, 128>}, {transform_indices = @transform_3, window_bounds = array<i64: 1, 8, 128>}]} {
    %c0_i32 = arith.constant 0 : i32
    %0 = arith.cmpi eq, %arg1, %c0_i32 : i32
    %1 = arith.extui %0 : i1 to i32
    %c0_i32_0 = arith.constant 0 : i32
    %2 = arith.cmpi ne, %1, %c0_i32_0 : i32
    scf.if %2 {
      %cst_13 = arith.constant 0.000000e+00 : f32
      %29 = vector.broadcast %cst_13 : f32 to vector<16x128xf32>
      %c0_14 = arith.constant 0 : index
      %c0_15 = arith.constant 0 : index
      %30 = vector.load %arg6[%c0_14, %c0_15] : memref<16x128xf32, #tpu.memory_space<vmem>>, vector<16x128xf32>
      tpu.vector_store %arg6[%c0_14, %c0_15], %29 {strides = array<i32>} : memref<16x128xf32, #tpu.memory_space<vmem>>, vector<16x128xf32>,
    } else {
    }
    %c0 = arith.constant 0 : index
    %c0_1 = arith.constant 0 : index
    %3 = vector.load %arg2[%c0, %c0_1] : memref<16x128xf32, #tpu.memory_space<vmem>>, vector<16x128xf32>
    %c0_2 = arith.constant 0 : index
    %c0_3 = arith.constant 0 : index
    %4 = vector.load %arg3[%c0_2, %c0_3] : memref<16x128xi32, #tpu.memory_space<vmem>>, vector<16x128xi32>
    %c0_4 = arith.constant 0 : index
    %c0_5 = arith.constant 0 : index
    %5 = vector.load %arg4[%c0_4, %c0_5] : memref<16x128xf32, #tpu.memory_space<vmem>>, vector<16x128xf32>
    %6 = tpu.iota {dimensions = array<i32: 1>} : vector<16x128xi32>
    %c15_i32 = arith.constant 15 : i32
    %7 = vector.broadcast %c15_i32 : i32 to vector<16x128xi32>
    %8 = arith.andi %6, %7 : vector<16x128xi32>
    %9 = arith.cmpi eq, %4, %8 : vector<16x128xi32>
    %10 = arith.extui %9 : vector<16x128xi1> to vector<16x128xi32>
    %11 = arith.sitofp %10 : vector<16x128xi32> to vector<16x128xf32>
    %cst = arith.constant 0.000000e+00 : f32
    %12 = vector.broadcast %cst : f32 to vector<16x128xf32>
    %13 = arith.maximumf %3, %12 : vector<16x128xf32>
    %14 = arith.mulf %3, %11 : vector<16x128xf32>
    %15 = arith.subf %13, %14 : vector<16x128xf32>
    %16 = math.absf %3 : vector<16x128xf32>
    %cst_6 = arith.constant 0.000000e+00 : f32
    %17 = vector.broadcast %cst_6 : f32 to vector<16x128xf32>
    %18 = arith.subf %17, %16 : vector<16x128xf32>
    %19 = math.exp %18 : vector<16x128xf32>
    %20 = math.log1p %19 : vector<16x128xf32>
    %21 = arith.addf %15, %20 : vector<16x128xf32>
    %c0_7 = arith.constant 0 : index
    %c0_8 = arith.constant 0 : index
    %22 = vector.load %arg6[%c0_7, %c0_8] : memref<16x128xf32, #tpu.memory_space<vmem>>, vector<16x128xf32>
    %23 = arith.mulf %21, %5 : vector<16x128xf32>
    %24 = arith.addf %22, %23 : vector<16x128xf32>
    %c0_9 = arith.constant 0 : index
    %c0_10 = arith.constant 0 : index
    %25 = vector.load %arg6[%c0_9, %c0_10] : memref<16x128xf32, #tpu.memory_space<vmem>>, vector<16x128xf32>
    tpu.vector_store %arg6[%c0_9, %c0_10], %24 {strides = array<i32>} : memref<16x128xf32, #tpu.memory_space<vmem>>, vector<16x128xf32>,
    %c0_i32_11 = arith.constant 0 : i32
    %26 = arith.cmpi eq, %arg1, %c0_i32_11 : i32
    %27 = arith.extui %26 : i1 to i32
    %c0_i32_12 = arith.constant 0 : i32
    %28 = arith.cmpi ne, %27, %c0_i32_12 : i32
    scf.if %28 {
      %c0_13 = arith.constant 0 : index
      %c0_14 = arith.constant 0 : index
      %29 = vector.load %arg6[%c0_13, %c0_14] : memref<16x128xf32, #tpu.memory_space<vmem>>, vector<16x128xf32>
      %30 = vector.extract_strided_slice %29 {offsets = [0, 0], sizes = [8, 128], strides = [1, 1]} : vector<16x128xf32> to vector<8x128xf32>
      %31 = vector.extract_strided_slice %29 {offsets = [8, 0], sizes = [8, 128], strides = [1, 1]} : vector<16x128xf32> to vector<8x128xf32>
      %32 = arith.addf %30, %31 : vector<8x128xf32>
      %c0_15 = arith.constant 0 : index
      %c0_16 = arith.constant 0 : index
      %c0_17 = arith.constant 0 : index
      %33 = vector.load %arg5[%c0_15, %c0_16, %c0_17] : memref<1x8x128xf32, #tpu.memory_space<vmem>>, vector<1x8x128xf32>
      %34 = vector.shape_cast %33 : vector<1x8x128xf32> to vector<8x128xf32>
      %35 = vector.shape_cast %32 : vector<8x128xf32> to vector<1x8x128xf32>
      tpu.vector_store %arg5[%c0_15, %c0_16, %c0_17], %35 {strides = array<i32>} : memref<1x8x128xf32, #tpu.memory_space<vmem>>, vector<1x8x128xf32>,
    } else {
    }
    return
  }
  func.func @transform_0(%arg0: i32, %arg1: i32) -> (i32, i32) {
    %c1_i32 = arith.constant 1 : i32
    %0 = arith.muli %arg0, %c1_i32 : i32
    %1 = arith.addi %0, %arg1 : i32
    %c0_i32 = arith.constant 0 : i32
    %c0_i32_0 = arith.constant 0 : i32
    return %1, %c0_i32 : i32, i32
  }
  func.func @transform_1(%arg0: i32, %arg1: i32) -> (i32, i32) {
    %c1_i32 = arith.constant 1 : i32
    %0 = arith.muli %arg0, %c1_i32 : i32
    %1 = arith.addi %0, %arg1 : i32
    %c0_i32 = arith.constant 0 : i32
    %c0_i32_0 = arith.constant 0 : i32
    return %1, %c0_i32 : i32, i32
  }
  func.func @transform_2(%arg0: i32, %arg1: i32) -> (i32, i32) {
    %c1_i32 = arith.constant 1 : i32
    %0 = arith.muli %arg0, %c1_i32 : i32
    %1 = arith.addi %0, %arg1 : i32
    %c0_i32 = arith.constant 0 : i32
    %c0_i32_0 = arith.constant 0 : i32
    return %1, %c0_i32 : i32, i32
  }
  func.func @transform_3(%arg0: i32, %arg1: i32) -> (i32, i32, i32) {
    %c0_i32 = arith.constant 0 : i32
    %c0_i32_0 = arith.constant 0 : i32
    %c0_i32_1 = arith.constant 0 : i32
    return %arg0, %c0_i32, %c0_i32_0 : i32, i32, i32
  }
}

</mosaic_0001>

<bundles_post_ra>
// kernel: topk_loss.1
= control target key start
LH: loop header
LB: loop body
LE: loop exit
PB: predicated region body
PF: predicated region fallthrough
CT: control target
= control target key end

     0   :  { %s497_s12 = smov 0   ;;  %s499_s13 = smov 0   ;;  %s546_s0 = inlined_call_operand.vmem [shape: f32[32,128], index: 0, kind: input, shape index: {}]   ;;  %s547_s1 = inlined_call_operand.vmem [shape: s32[32,128], index: 1, kind: input, shape index: {}]   ;;  %s548_s2 = inlined_call_operand.vmem [shape: f32[32,128], index: 2, kind: input, shape index: {}]   ;;  %s549_s3 = inlined_call_operand.vmem [shape: f32[2,8,128], index: 3, kind: output, shape index: {}]  }
   0x1   :  { %s501_s14 = smov 0  }
   0x2 LB: > { %s25_s15 = sadd.s32 1, %s470_s13  ;;  %p407_p0 = scmp.ge.s32.totalorder %s474_s14, 1  ;;  %s474_s14 = sphi %s501_s14, %s13_s14   ;;  %s470_s13 = sphi %s499_s13, %s551_s13   ;;  %s466_s12 = sphi %s497_s12, %s550_s12  }
   0x3   : > { %p27_p1 = scmp.ge.s32.totalorder %s25_s15, 2  ;;  %p184_p2 = scmp.lt.s32.totalorder %s474_s14, 3 }
   0x5   : > { %s553_s15 = smov (%p27_p1, %s25_s15), 0  ;;  %p185_p3 = pnand %p407_p0, %p184_p2 }
   0x6   : > { %s408_s16 = sshll.u32 (!%p185_p3), %s466_s12, 1  ;;  %v260_v8 = vlaneseq (!%p185_p3)  ;;  %v476_v19 = vmov (!%p185_p3), 0.0   ;;  %p244_p5 = scmp.lt.s32.totalorder (!%p185_p3), %s466_s12, 1 }
   0x7   : > { %188 = sbr.rel (%p185_p3) target bundleno = 59 (0x3b), region = 32  ;;  %p222_p4 = scmp.lt.s32.totalorder (!%p185_p3), %s408_s16, 3 }
   0x8   : > { %v261_v9 = vand.u32 (!%p185_p3), 127, %v260_v8 }
   0xa   : > { %v262_v10 = vand.u32 (!%p185_p3), 15, %v261_v9 }
   0xe   : > { %s555_s16 = smov (!%p222_p4, %s408_s16), 3  ;;  %s557_s12 = smov (!%p244_p5, %s466_s12), 1 }
   0xf   : > { %s518_s17 = sshll.u32 %s555_s16, 3  ;;  %s414_s27 = sshll.u32 %s557_s12, 3 }
  0x10   : > { %s225_s20 = scalar_lea.vmem %s546_s0, %s518_s17  ;;  %s233_s23 = scalar_lea.vmem %s547_s1, %s518_s17 }
  0x11   : > { %v254_v0 = vld [vmem:[%s225_s20] sm:$0xff]  ;;  %v255_v1 = vld [vmem:[%s225_s20 + $0x8] sm:$0xff]  ;;  %s241_s26 = scalar_lea.vmem %s548_s2, %s518_s17  ;;  %s247_s30 = scalar_lea.vmem %s549_s3, %s414_s27 }
  0x12   : > { %v275_v2 = vand.u32 2147483647, %v254_v0  ;;  %v276_v3 = vand.u32 2147483647, %v255_v1  ;;  %v256_v12 = vld [vmem:[%s233_s23] sm:$0xff]  ;;  %v257_v14 = vld [vmem:[%s233_s23 + $0x8] sm:$0xff] }
  0x13   : > { %vm263_vm0 = vcmp.eq.s32.totalorder %v256_v12, %v262_v10  ;;  %vm264_vm1 = vcmp.eq.s32.totalorder %v257_v14, %v262_v10  ;;  %v269_v23 = vmax.f32 %v254_v0, 0.0  ;;  %v270_v27 = vmax.f32 %v255_v1, 0.0  ;;  %v258_v38 = vld [vmem:[%s241_s26] sm:$0xff]  ;;  %v259_v40 = vld [vmem:[%s241_s26 + $0x8] sm:$0xff] }
  0x14   : > { %v277_v4 = vsub.f32 0.0, %v275_v2  ;;  %v278_v5 = vsub.f32 0.0, %v276_v3  ;;  %v415_v20 = vsel %vm263_vm0, 1.0, %v476_v19  ;;  %v416_v21 = vsel %vm264_vm1, 1.0, %v476_v19 }
  0x15   : > { %v271_v24 = vmul.f32 %v415_v20, %v254_v0  ;;  %v272_v28 = vmul.f32 %v416_v21, %v255_v1 }
  0x16   : > { %v279_v6 = vmul.f32 1.442695, %v277_v4  ;;  %v281_v7 = vmul.f32 1.442695, %v278_v5 }
  0x17   : > { %v273_v32 = vsub.f32 %v269_v23, %v271_v24  ;;  %v274_v35 = vsub.f32 %v270_v27, %v272_v28 }
  0x18   : > { %444 = vpow2.f32 %v279_v6 }
  0x19   : > { %446 = vpow2.f32 %v281_v7 }
  0x22   : > { %v445_v11 = vpop.eup %444 }
  0x23   : > { %v447_v13 = vpop.eup %446  ;;  %v283_v15 = vadd.f32 1.0, %v445_v11  ;;  %v286_v17 = vmul.f32 -0.5, %v445_v11  ;;  %v289_v25 = vand.u32 2147483647, %v445_v11 }
  0x24   : > { %v292_v16 = vadd.f32 1.0, %v447_v13  ;;  %v295_v18 = vmul.f32 -0.5, %v447_v13  ;;  %v298_v29 = vand.u32 2147483647, %v447_v13 }
  0x25   : > { %448 = vlog2.f32 %v283_v15  ;;  %v287_v22 = vadd.f32 1.0, %v286_v17  ;;  %vm290_vm2 = vcmp.lt.f32.partialorder %v289_v25, 0.0004427343 }
  0x26   : > { %450 = vlog2.f32 %v292_v16  ;;  %v296_v26 = vadd.f32 1.0, %v295_v18  ;;  %vm299_vm3 = vcmp.lt.f32.partialorder %v298_v29, 0.0004427343 }
  0x27   : > { %v288_v30 = vmul.f32 %v445_v11, %v287_v22 }
  0x28   : > { %v297_v33 = vmul.f32 %v447_v13, %v296_v26 }
  0x2f   : > { %v449_v31 = vpop.eup %448 }
  0x30   : > { %v451_v34 = vpop.eup %450  ;;  %v285_v36 = vmul.f32 0.6931472, %v449_v31 }
  0x31   : > { %v294_v37 = vmul.f32 0.6931472, %v451_v34 }
  0x32   : > { %v291_v39 = vsel %vm290_vm2, %v288_v30, %v285_v36 }
  0x33   : > { %v300_v41 = vsel %vm299_vm3, %v297_v33, %v294_v37  ;;  %v301_v42 = vadd.f32 %v291_v39, %v273_v32 }
  0x34   : > { %v302_v43 = vadd.f32 %v300_v41, %v274_v35 }
  0x35   : > { %v305_v44 = vmul.f32 %v301_v42, %v258_v38 }
  0x36   : > { %v306_v45 = vmul.f32 %v302_v43, %v259_v40 }
  0x38   : > { %v316_v46 = vadd.f32 %v306_v45, %v305_v44 }
  0x3a   : > { %317 = vst [vmem:[%s247_s30] sm:$0xff] %v316_v46 }
  0x3b PF: > { %s13_s14 = sadd.s32 1, %s474_s14   ;;  %s550_s12 = smov %s470_s13 }
  0x3c   : > { %p10_p6 = scmp.ge.s32.totalorder %s13_s14, 4   ;;  %s551_s13 = smov %s553_s15 }
  0x3e   :  { %12 = sbr.rel (!%p10_p6) target bundleno = 2 (0x2), region = 76 }

</bundles_post_ra>
